<compile_context>
chip_gen: v7x
topology: tpu7x:2x2x1
jax: 0.10.0
libtpu: 0.0.40
codegen_flags: <defaults>
</compile_context>

<pallas_src>
import functools

import jax
import jax.numpy as jnp
from jax.experimental import pallas as pl
from jax.experimental.pallas import tpu as pltpu


def _softplus(z):
    # Numerically-stable softplus; same formula used in kernel and reference.
    return jnp.maximum(z, 0.0) + jnp.log(1.0 + jnp.exp(-jnp.abs(z)))


def _barrier_kernel(x_ref, w1_ref, b1_ref, w2_ref, c0_ref, o_ref, *,
                    ell_coef, barrier_coef, env_const):
    x = x_ref[...]                                                     # (tB, D) f32
    # net hidden layer on the MXU, f32 accumulation
    h1 = jnp.dot(x, w1_ref[...], preferred_element_type=jnp.float32) + b1_ref[...]
    h1 = jnp.maximum(h1, 0.0)                                          # ReLU
    # net output layer (hidden -> 1): VPU mul + XLU lane reduce
    # c0 = b2 - net(s0)  (folded host-side)  =>  z = net(x) - net(s0)
    z = jnp.sum(h1 * w2_ref[...], axis=-1, keepdims=True) + c0_ref[...]  # (tB, 1)
    sp = _softplus(z) * ell_coef
    # env_barrier_fn(x) * barrier_coef - 1, with radius**2*barrier_coef - 1 folded
    ss = jnp.sum(x * x, axis=-1, keepdims=True)                        # ||x||^2, (tB, 1)
    o_ref[...] = (sp - ss * barrier_coef + env_const).astype(o_ref.dtype)


def barrier_forward(states, w1, b1, w2, b2, s0, *, ell_coef, barrier_coef, radius):
    """Fused Barrier forward: softplus(net(x) - net(s0)) * ell + env(x) * bc - 1."""
    B, obs_dim = states.shape
    hidden = w1.shape[1]
    tB = min(128, B)
    assert B % tB == 0, "batch must be a multiple of the batch tile"

    hi = jax.lax.Precision.HIGHEST
    # Host-side constant folding (tiny one-row compute, once per parameter set).
    h0 = jnp.dot(jnp.maximum(jnp.dot(s0[None, :], w1, precision=hi) + b1[None, :], 0.0),
                 w2[:, None], precision=hi) + b2                        # net(s0), (1,1)
    c0 = (b2 - h0).reshape(1, 1).astype(jnp.float32)                    # b2 - net(s0)
    env_const = float(radius) ** 2 * float(barrier_coef) - 1.0

    b1_row = b1.reshape(1, hidden).astype(jnp.float32)
    w2_row = w2.reshape(1, hidden).astype(jnp.float32)

    kernel = functools.partial(
        _barrier_kernel,
        ell_coef=float(ell_coef),
        barrier_coef=float(barrier_coef),
        env_const=env_const,
    )

    return pl.pallas_call(
        kernel,
        out_shape=jax.ShapeDtypeStruct((B, 1), jnp.float32),
        grid=(B // tB,),
        in_specs=[
            pl.BlockSpec((tB, obs_dim), lambda i: (i, 0)),       # states tile
            pl.BlockSpec((obs_dim, hidden), lambda i: (0, 0)),   # W1 (resident across grid)
            pl.BlockSpec((1, hidden), lambda i: (0, 0)),         # b1
            pl.BlockSpec((1, hidden), lambda i: (0, 0)),         # w2 (row layout)
            pl.BlockSpec((1, 1), lambda i: (0, 0)),              # folded constant c0
        ],
        out_specs=pl.BlockSpec((tB, 1), lambda i: (i, 0)),
        compiler_params=pltpu.CompilerParams(
            dimension_semantics=("parallel",),   # v7x: both TensorCores split the batch
        ),
    )(states, w1, b1_row, w2_row, c0)


if __name__ == "__main__":
    # MXU/VPU-aligned but still small shapes (per perf review: M >= 128, dims % 128 == 0).
    B, OBS_DIM, HIDDEN = 256, 128, 128
    ELL_COEF, BARRIER_COEF, RADIUS = 0.5, 1.5, 2.0

    key = jax.random.PRNGKey(0)
    ks, kw1, kb1, kw2, kb2, ks0 = jax.random.split(key, 6)

    states = jax.random.normal(ks, (B, OBS_DIM), dtype=jnp.float32)
    w1 = jax.random.normal(kw1, (OBS_DIM, HIDDEN), dtype=jnp.float32) * 0.1
    b1 = jax.random.normal(kb1, (HIDDEN,), dtype=jnp.float32) * 0.1
    w2 = jax.random.normal(kw2, (HIDDEN,), dtype=jnp.float32) * 0.1
    b2 = jax.random.normal(kb2, (), dtype=jnp.float32) * 0.1
    s0 = jax.random.normal(ks0, (OBS_DIM,), dtype=jnp.float32)

    out = barrier_forward(states, w1, b1, w2, b2, s0,
                          ell_coef=ELL_COEF, barrier_coef=BARRIER_COEF, radius=RADIUS)
    out = jax.block_until_ready(out)

    # Pure-JAX reference of the same semantics.
    hi = jax.lax.Precision.HIGHEST

    def net(x):
        h = jnp.maximum(jnp.dot(x, w1, precision=hi) + b1[None, :], 0.0)
        return jnp.dot(h, w2[:, None], precision=hi) + b2

    env = RADIUS ** 2 - jnp.sum(states * states, axis=-1, keepdims=True)
    ref = _softplus(net(states) - net(s0[None, :])) * ELL_COEF + env * BARRIER_COEF - 1.0

    assert out.shape == (B, 1)
    assert jnp.allclose(out, ref, atol=1e-4, rtol=1e-4), float(jnp.max(jnp.abs(out - ref)))

    # TODO(synk): `net` and `env_barrier_fn` are unspecified external callables; a 2-layer
    # ReLU MLP and a quadratic (radius^2 - ||s||^2) env barrier stand in for them here.
    print("KERNEL_OK")
</pallas_src>

<mosaic_0001>
module attributes {stable_mosaic.version = 11 : i64} {
  func.func @_barrier_kernel(%arg0: i32, %arg1: memref<128x128xf32, #tpu.memory_space<vmem>>, %arg2: memref<128x128xf32, #tpu.memory_space<vmem>>, %arg3: memref<1x128xf32, #tpu.memory_space<vmem>>, %arg4: memref<1x128xf32, #tpu.memory_space<vmem>>, %arg5: memref<1x1xf32, #tpu.memory_space<vmem>>, %arg6: memref<128x1xf32, #tpu.memory_space<vmem>>) attributes {dimension_semantics = [#tpu.dimension_semantics<parallel>], iteration_bounds = array<i64: 2>, scalar_prefetch = 0 : i64, scratch_operands = 0 : i64, tpu.core_type = #tpu.core_type<tc>, window_params = [{transform_indices = @transform_0, window_bounds = array<i64: 128, 128>}, {pipeline_mode = #tpu.pipeline_mode<synchronous>, transform_indices = @transform_1, window_bounds = array<i64: 128, 128>}, {pipeline_mode = #tpu.pipeline_mode<synchronous>, transform_indices = @transform_2, window_bounds = array<i64: 1, 128>}, {pipeline_mode = #tpu.pipeline_mode<synchronous>, transform_indices = @transform_3, window_bounds = array<i64: 1, 128>}, {pipeline_mode = #tpu.pipeline_mode<synchronous>, transform_indices = @transform_4, window_bounds = array<i64: 1, 1>}, {transform_indices = @transform_5, window_bounds = array<i64: 128, 1>}]} {
    %c0 = arith.constant 0 : index
    %c0_0 = arith.constant 0 : index
    %0 = vector.load %arg1[%c0, %c0_0] : memref<128x128xf32, #tpu.memory_space<vmem>>, vector<128x128xf32>
    %c0_1 = arith.constant 0 : index
    %c0_2 = arith.constant 0 : index
    %1 = vector.load %arg2[%c0_1, %c0_2] : memref<128x128xf32, #tpu.memory_space<vmem>>, vector<128x128xf32>
    %cst = arith.constant dense<0.000000e+00> : vector<128x128xf32>
    %2 = tpu.matmul %0, %1, %cst {dimension_numbers = #tpu.dot_dimension_numbers<[1], [0], [0], [1], [0, 0, 1, 1], [], []>} : vector<128x128xf32>, vector<128x128xf32>, vector<128x128xf32> -> vector<128x128xf32>
    %c0_3 = arith.constant 0 : index
    %c0_4 = arith.constant 0 : index
    %3 = vector.load %arg3[%c0_3, %c0_4] : memref<1x128xf32, #tpu.memory_space<vmem>>, vector<1x128xf32>
    %4 = vector.broadcast %3 : vector<1x128xf32> to vector<128x128xf32>
    %5 = arith.addf %2, %4 : vector<128x128xf32>
    %cst_5 = arith.constant 0.000000e+00 : f32
    %6 = vector.broadcast %cst_5 : f32 to vector<128x128xf32>
    %7 = arith.maximumf %5, %6 : vector<128x128xf32>
    %c0_6 = arith.constant 0 : index
    %c0_7 = arith.constant 0 : index
    %8 = vector.load %arg4[%c0_6, %c0_7] : memref<1x128xf32, #tpu.memory_space<vmem>>, vector<1x128xf32>
    %9 = vector.broadcast %8 : vector<1x128xf32> to vector<128x128xf32>
    %10 = arith.mulf %7, %9 : vector<128x128xf32>
    %cst_8 = arith.constant dense<0.000000e+00> : vector<128xf32>
    %11 = vector.multi_reduction <add>, %10, %cst_8 [1] : vector<128x128xf32> to vector<128xf32>
    %12 = vector.shape_cast %11 : vector<128xf32> to vector<128x1xf32>
    %c0_9 = arith.constant 0 : index
    %c0_10 = arith.constant 0 : index
    %13 = vector.load %arg5[%c0_9, %c0_10] : memref<1x1xf32, #tpu.memory_space<vmem>>, vector<1x1xf32>
    %14 = vector.broadcast %13 : vector<1x1xf32> to vector<128x1xf32>
    %15 = arith.addf %12, %14 : vector<128x1xf32>
    %cst_11 = arith.constant 0.000000e+00 : f32
    %16 = vector.broadcast %cst_11 : f32 to vector<128x1xf32>
    %17 = arith.maximumf %15, %16 : vector<128x1xf32>
    %18 = math.absf %15 : vector<128x1xf32>
    %cst_12 = arith.constant 0.000000e+00 : f32
    %19 = vector.broadcast %cst_12 : f32 to vector<128x1xf32>
    %20 = arith.subf %19, %18 : vector<128x1xf32>
    %21 = math.exp %20 : vector<128x1xf32>
    %cst_13 = arith.constant 1.000000e+00 : f32
    %22 = vector.broadcast %cst_13 : f32 to vector<128x1xf32>
    %23 = arith.addf %22, %21 : vector<128x1xf32>
    %24 = math.log %23 : vector<128x1xf32>
    %25 = arith.addf %17, %24 : vector<128x1xf32>
    %cst_14 = arith.constant 5.000000e-01 : f32
    %26 = vector.broadcast %cst_14 : f32 to vector<128x1xf32>
    %27 = arith.mulf %25, %26 : vector<128x1xf32>
    %28 = arith.mulf %0, %0 : vector<128x128xf32>
    %cst_15 = arith.constant dense<0.000000e+00> : vector<128xf32>
    %29 = vector.multi_reduction <add>, %28, %cst_15 [1] : vector<128x128xf32> to vector<128xf32>
    %30 = vector.shape_cast %29 : vector<128xf32> to vector<128x1xf32>
    %cst_16 = arith.constant 1.500000e+00 : f32
    %31 = vector.broadcast %cst_16 : f32 to vector<128x1xf32>
    %32 = arith.mulf %30, %31 : vector<128x1xf32>
    %33 = arith.subf %27, %32 : vector<128x1xf32>
    %cst_17 = arith.constant 5.000000e+00 : f32
    %34 = vector.broadcast %cst_17 : f32 to vector<128x1xf32>
    %35 = arith.addf %33, %34 : vector<128x1xf32>
    %c0_18 = arith.constant 0 : index
    %c0_19 = arith.constant 0 : index
    %36 = vector.load %arg6[%c0_18, %c0_19] : memref<128x1xf32, #tpu.memory_space<vmem>>, vector<128x1xf32>
    tpu.vector_store %arg6[%c0_18, %c0_19], %35 {strides = array<i32>} : memref<128x1xf32, #tpu.memory_space<vmem>>, vector<128x1xf32>,
    return
  }
  func.func @transform_0(%arg0: i32) -> (i32, i32) {
    %c0_i32 = arith.constant 0 : i32
    %c0_i32_0 = arith.constant 0 : i32
    return %arg0, %c0_i32 : i32, i32
  }
  func.func @transform_1(%arg0: i32) -> (i32, i32) {
    %c0_i32 = arith.constant 0 : i32
    %c0_i32_0 = arith.constant 0 : i32
    %c0_i32_1 = arith.constant 0 : i32
    return %c0_i32, %c0_i32_0 : i32, i32
  }
  func.func @transform_2(%arg0: i32) -> (i32, i32) {
    %c0_i32 = arith.constant 0 : i32
    %c0_i32_0 = arith.constant 0 : i32
    %c0_i32_1 = arith.constant 0 : i32
    return %c0_i32, %c0_i32_0 : i32, i32
  }
  func.func @transform_3(%arg0: i32) -> (i32, i32) {
    %c0_i32 = arith.constant 0 : i32
    %c0_i32_0 = arith.constant 0 : i32
    %c0_i32_1 = arith.constant 0 : i32
    return %c0_i32, %c0_i32_0 : i32, i32
  }
  func.func @transform_4(%arg0: i32) -> (i32, i32) {
    %c0_i32 = arith.constant 0 : i32
    %c0_i32_0 = arith.constant 0 : i32
    %c0_i32_1 = arith.constant 0 : i32
    return %c0_i32, %c0_i32_0 : i32, i32
  }
  func.func @transform_5(%arg0: i32) -> (i32, i32) {
    %c0_i32 = arith.constant 0 : i32
    %c0_i32_0 = arith.constant 0 : i32
    return %arg0, %c0_i32 : i32, i32
  }
}

</mosaic_0001>

<bundles_post_ra>
// kernel: tpu_custom_call.1
= control target key start
LH: loop header
LB: loop body
LE: loop exit
PB: predicated region body
PF: predicated region fallthrough
CT: control target
= control target key end

     0   :  { %s1744_s0 = inlined_call_operand.hbm [shape: f32[256,128], index: 0, kind: input, shape index: {}]   ;;  %s1745_s1 = inlined_call_operand.hbm [shape: f32[128,128], index: 1, kind: input, shape index: {}]   ;;  %s1746_s2 = inlined_call_operand.vmem [shape: f32[1,128], index: 2, kind: input, shape index: {}]   ;;  %s1747_s3 = inlined_call_operand.vmem [shape: f32[1,128], index: 3, kind: input, shape index: {}]   ;;  %s1748_s4 = inlined_call_operand.<no memory space> [shape: f32[1,1], index: 4, kind: input, shape index: {}]   ;;  %s1749_s5 = inlined_call_operand.vmem [shape: f32[256,1], index: 5, kind: output, shape index: {}]  }
   0x1   :  { %v10_v0 = vstv %s1748_s4 }
   0x2   :  { %11 = vst [vmem:[#allocation2] sm:$0x1] %v10_v0 }
   0x3   :  { %12 = vsyncpa [#allocation4], 0 }
   0x4   :  { %14 = vsyncpa [#allocation4 + $0x1], 0 }
   0x5   :  { %15 = vsyncpa [#allocation6], 0  ;;  %s1298_s20 = smov 0   ;;  %s1300_s21 = smov 0  }
   0x6   :  { %s1302_s22 = smov 0   ;;  %s1304_s23 = smov 0  }
   0x7 LB: > { %s892_s4 = sadd.s32 4294967295, %s1259_s23   ;;  %p41_p0 = scmp.ne.s32.totalorder %s1251_s21, %s1247_s20  ;;  %s1259_s23 = sphi %s1304_s23, %s1766_s23   ;;  %s1255_s22 = sphi %s1302_s22, %s1765_s22   ;;  %s1251_s21 = sphi %s1300_s21, %s1764_s21   ;;  %s1247_s20 = sphi %s1298_s20, %s1763_s20  }
   0x8   : > { %p1320_p1 = scmp.eq.s32.totalorder %s892_s4, 0  ;;  %p894_p2 = scmp.ge.s32.totalorder %s1259_s23, 1 }
   0x9   : > { %p162_p3 = scmp.lt.s32.totalorder %s1259_s23, 3  ;;  %s1261_s27 = smov [#allocation5]  }
   0xa   : > { %s1754_s24 = scalar_select %p1320_p1, 1, 0 }
   0xb   : > { %p1328_p4 = por %p1320_p1, %p41_p0  ;;  %p1332_p5 = pnand %p894_p2, %p162_p3 }
   0xc   : > { %s174_s28 = sshll.u32 %s1261_s27, 4  ;;  %s1345_s30 = sadd.s32 1, %s1259_s23   ;;  %s175_s28 = int_to_ptr.vmem [resolvable:$true] %s174_s28 }
   0xd   : > { %s1755_s25 = scalar_select %p1328_p4, 1, 0 }
   0xe   : > { %s1756_s26 = scalar_select %p1332_p5, 1, 0 }
   0xf   : > { %p1053_p6 = pneg %p1332_p5  ;;  %s28_s6 = sadd.s32 1, %s1255_s22 }
  0x10   : > { %s25_s7 = ssub.s32 %s1259_s23, %s1345_s30  ;;  %s1163_s10 = scalar_lea.hbm %s1745_s1, 2048 }
  0x11   : > { %p1340_p7 = pnand %p1053_p6, %p1320_p1  ;;  %p1164_p8 = scmp.ne.s32.totalorder %s1745_s1, %s1163_s10 }
  0x12   : > { %p1170_p12 = scmp.lt.u32.totalorder %s1163_s10, %s1745_s1 }
  0x13   : > { %p1165_p9 = pneg %p1340_p7 }
  0x15   : > { %p1166_p10 = pnand %p1165_p9, %p1164_p8 }
  0x17   : > { %p1167_p11 = pneg %p1166_p10 }
  0x19   : > { %p1172_p13 = pnand %p1170_p12, %p1167_p11 }
  0x1b   : > { %1175 = shalt.err (!%p1172_p13)
}
  0x1c   : > { %s1176_s15 = scalar_lea.vmem %s175_s28, 2048  ;;  %p1184_p6 = scmp.lt.s32.totalorder %s175_s28, %s175_s28 }
  0x1d   : > { %p1177_p0 = scmp.ne.s32.totalorder %s175_s28, %s1176_s15  ;;  %p1185_p1 = scmp.lt.s32.totalorder %s1176_s15, %s1176_s15 }
  0x1f   : > { %p1179_p2 = pnand %p1177_p0, %p1165_p9  ;;  %p1186_p4 = por %p1185_p1, %p1184_p6 }
  0x21   : > { %p1180_p3 = pneg %p1179_p2 }
  0x23   : > { %p1187_p5 = pnand %p1186_p4, %p1180_p3 }
  0x25   : > { %1190 = shalt.err (!%p1187_p5)
}
  0x26   : > { %s1262_s16 = smov 128   ;;  %s1263_s17 = smov 8  }
  0x27   : > { %1056 = dma.hbm_to_vmem [thread:$0]  (!%p1340_p7), %s1745_s1, 2048, %s175_s28, [#allocation6], %s1262_s16, %s1262_s16, %s1263_s17  }
  0x28   : > { %p26_p1 = scmp.eq.s32.totalorder %s25_s7, 0  ;;  %p35_p4 = scmp.ne.s32.totalorder %s1255_s22, %s1251_s21 }
  0x29   : > { %p36_p5 = scmp.eq.s32.totalorder %s1259_s23, 0  ;;  %p1062_p8 = scmp.lt.s32.totalorder %s1259_s23, 2 }
  0x2a   : > { %s1374_s20 = scalar_select %p26_p1, %s1255_s22, %s28_s6  }
  0x2b   : > { %p37_p9 = por %p36_p5, %p35_p4  ;;  %s197_s27 = sand.u32 1, %s1255_s22  }
  0x2c   : > { %s897_s8 = sshll.u32 %s197_s27, 7  ;;  %s910_s9 = sshll.u32 %s1259_s23, 11 }
  0x2d   : > { %s1381_s29 = scalar_lea.hbm %s1744_s0, %s910_s9  ;;  %s201_s28 = scalar_lea.vmem [#allocation3], %s897_s8 }
  0x2e   : > { %s208_s7 = sshll.u32 %s201_s28, 4  ;;  %p1385_p7 = pnand %p1062_p8, %p37_p9  ;;  %s1383_s7 = int_to_ptr.vmem [resolvable:$true] %s208_s7 }
  0x2f   : > { %s1389_s12 = scalar_lea.sflag [#allocation4], %s197_s27  ;;  %s1191_s13 = scalar_lea.hbm %s1381_s29, 2048 }
  0x30   : > { %p1192_p10 = scmp.ne.s32.totalorder %s1381_s29, %s1191_s13  ;;  %p1193_p11 = pneg %p1385_p7 }
  0x31   : > { %s1196_s18 = scalar_lea.hbm %s1744_s0, 4096  ;;  %p1197_p0 = scmp.lt.u32.totalorder %s1381_s29, %s1744_s0 }
  0x32   : > { %p1194_p12 = pnand %p1193_p11, %p1192_p10  ;;  %p1198_p2 = scmp.lt.u32.totalorder %s1196_s18, %s1191_s13 }
  0x33   : > { %p1200_p6 = scmp.lt.u32.totalorder %s1191_s13, %s1381_s29 }
  0x34   : > { %p1195_p13 = pneg %p1194_p12  ;;  %p1199_p3 = por %p1198_p2, %p1197_p0 }
  0x36   : > { %p1201_p1 = por %p1200_p6, %p1199_p3 }
  0x38   : > { %p1202_p4 = pnand %p1201_p1, %p1195_p13 }
  0x3a   : > { %1205 = shalt.err (!%p1202_p4)
}
  0x3b   : > { %s1206_s27 = scalar_lea.vmem %s1383_s7, 2048  ;;  %s1264_s9 = smov [#allocation3]  }
  0x3c   : > { %p1207_p5 = scmp.ne.s32.totalorder %s1383_s7, %s1206_s27  ;;  %s1211_s10 = sshll.u32 %s1264_s9, 4  ;;  %s1212_s10 = int_to_ptr.vmem [resolvable:$false] %s1211_s10 }
  0x3d   : > { %s1213_s11 = scalar_lea.vmem %s1212_s10, 4096  ;;  %p1214_p10 = scmp.lt.s32.totalorder %s1383_s7, %s1212_s10 }
  0x3e   : > { %p1209_p8 = pnand %p1207_p5, %p1193_p11  ;;  %p1215_p12 = scmp.lt.s32.totalorder %s1213_s11, %s1206_s27 }
  0x40   : > { %p1210_p9 = pneg %p1209_p8  ;;  %p1216_p0 = por %p1215_p12, %p1214_p10 }
  0x42   : > { %p1217_p2 = pnand %p1216_p0, %p1210_p9 }
  0x44   : > { %1220 = shalt.err (!%p1217_p2)
}
  0x45   : > { %1060 = dma.hbm_to_vmem [thread:$0]  (!%p1385_p7), %s1381_s29, 2048, %s1383_s7, %s1389_s12, %s1262_s16, %s1262_s16, %s1263_s17  }
  0x46   : > { %p1759_p11 = scmp.ne.s32.totalorder %s1756_s26, 0 }
  0x47   : > { %s222_s28 = sand.u32 (!%p1759_p11), 1, %s1251_s21   ;;  %p1760_p13 = scmp.ne.s32.totalorder (!%p1759_p11), %s1755_s25, 0 }
  0x48   : > { %220 = sbr.rel (%p1759_p11) target bundleno = 553 (0x229), region = 40  ;;  %s901_s13 = sshll.u32 (!%p1759_p11), %s222_s28, 7 }
  0x49   : > { %s223_s14 = scalar_lea.sflag (!%p1759_p11), [#allocation4], %s222_s28  ;;  %s1423_s15 = scalar_lea.vmem (!%p1759_p11), [#allocation3], %s901_s13 }
  0x4f   : > { %1238 = dma.done.wait (%p1760_p13), %s223_s14, 2048  }
  0x50   : > { %1240 = vsyncadd (%p1760_p13), %s223_s14, 4294965248  ;;  %p1761_p3 = scmp.ne.s32.totalorder %s1754_s24, 0 }
  0x52   : > { %1242 = dma.done.wait (%p1761_p3), [#allocation6], 2048  }
  0x53   : > { %1244 = vsyncadd (%p1761_p3), [#allocation6], 4294965248  ;;  %v280_v1 = vld [vmem:[#allocation5] sm:$0xff]  ;;  %v281_v2 = vld [vmem:[#allocation5 + $0x8] sm:$0xff]  ;;  %s1630_s17 = sshll.u32 %s892_s4, 4  ;;  %vm798_vm0 = vcmask 7168  }
  0x54   : > { %v282_v3 = vld [vmem:[#allocation5 + $0x10] sm:$0xff]  ;;  %v999_v4 = vpack.c.bf16 %v281_v2, %v280_v1  ;;  %v283_v5 = vld [vmem:[#allocation5 + $0x18] sm:$0xff]  ;;  %v284_v7 = vld [vmem:[#allocation5 + $0x20] sm:$0xff]  ;;  %p259_p7 = scmp.lt.s32.totalorder %s1630_s17, 31 }
  0x55   : > { %v1003_v6 = vpack.c.bf16 %v283_v5, %v282_v3  ;;  %v285_v8 = vld [vmem:[#allocation5 + $0x28] sm:$0xff]  ;;  %v1434_v10 = vld [vmem:[%s1423_s15] sm:$0xff]  ;;  %v286_v12 = vld [vmem:[#allocation5 + $0x30] sm:$0xff] }
  0x56   : > { %1000 = vmatprep.subr.bf16.mxu0 %v999_v4  ;;  %1031 = vmatprep.subr.bf16.mxu1 %v999_v4  ;;  %v1007_v9 = vpack.c.bf16 %v285_v8, %v284_v7  ;;  %v1437_v11 = vld [vmem:[%s1423_s15 + $0x40] sm:$0xff]  ;;  %v287_v13 = vld [vmem:[#allocation5 + $0x38] sm:$0xff]  ;;  %v289_v16 = vld [vmem:[#allocation5 + $0x48] sm:$0xff]  ;;  %s1768_s17 = smov (!%p259_p7, %s1630_s17), 31 }
  0x57   : > { %1002 = vmatpush3.bf16.msra.mxu0 %v999_v4  ;;  %1039 = vmatpush3.bf16.msra.mxu1 %v999_v4  ;;  %v1011_v14 = vpack.c.bf16 %v287_v13, %v286_v12  ;;  %v288_v15 = vld [vmem:[#allocation5 + $0x40] sm:$0xff]  ;;  %v290_v18 = vld [vmem:[#allocation5 + $0x50] sm:$0xff]  ;;  %v291_v19 = vld [vmem:[#allocation5 + $0x58] sm:$0xff]  ;;  %s904_s23 = sshll.u32 %s1768_s17, 3 }
  0x58   : > { %1004 = vmatprep.subr.bf16.mxu0 %v1003_v6  ;;  %1032 = vmatprep.subr.bf16.mxu1 %v1003_v6  ;;  %v1015_v17 = vpack.c.bf16 %v289_v16, %v288_v15  ;;  %v1019_v20 = vpack.c.bf16 %v291_v19, %v290_v18  ;;  %v292_v21 = vld [vmem:[#allocation5 + $0x60] sm:$0xff]  ;;  %v293_v22 = vld [vmem:[#allocation5 + $0x68] sm:$0xff]  ;;  %v294_v24 = vld [vmem:[#allocation5 + $0x70] sm:$0xff]  ;;  %s1665_s7 = scalar_lea.vmem %s1749_s5, %s904_s23 }
  0x59   : > { %975 = vmatprep.mubr.f32.mxu0 %v1434_v10  ;;  %987 = vmatprep.mubr.f32.mxu1 %v1437_v11  ;;  %v1023_v23 = vpack.c.bf16 %v293_v22, %v292_v21  ;;  %v295_v25 = vld [vmem:[#allocation5 + $0x78] sm:$0xff]  ;;  %v1442_v27 = vld [vmem:[%s1423_s15 + $0x8] sm:$0xff]  ;;  %v1448_v29 = vld [vmem:[%s1423_s15 + $0x10] sm:$0xff] }
  0x5a   : > { %v1027_v26 = vpack.c.bf16 %v295_v25, %v294_v24  ;;  %v1445_v28 = vld [vmem:[%s1423_s15 + $0x48] sm:$0xff]  ;;  %v1451_v30 = vld [vmem:[%s1423_s15 + $0x50] sm:$0xff]  ;;  %v1457_v31 = vld [vmem:[%s1423_s15 + $0x18] sm:$0xff] }
  0x5b   : > { %1006 = vmatpush3.bf16.msra.mxu0 %v1003_v6  ;;  %1040 = vmatpush3.bf16.msra.mxu1 %v1003_v6  ;;  %v1461_v32 = vld [vmem:[%s1423_s15 + $0x58] sm:$0xff]  ;;  %v1464_v33 = vld [vmem:[%s1423_s15 + $0x20] sm:$0xff]  ;;  %v1473_v35 = vld [vmem:[%s1423_s15 + $0x28] sm:$0xff] }
  0x5c   : > { %1008 = vmatprep.subr.bf16.mxu0 %v1007_v9  ;;  %1033 = vmatprep.subr.bf16.mxu1 %v1007_v9  ;;  %v1467_v34 = vld [vmem:[%s1423_s15 + $0x60] sm:$0xff]  ;;  %v1477_v36 = vld [vmem:[%s1423_s15 + $0x68] sm:$0xff]  ;;  %v1480_v37 = vld [vmem:[%s1423_s15 + $0x30] sm:$0xff] }
  0x5d   : > { %v1483_v38 = vld [vmem:[%s1423_s15 + $0x70] sm:$0xff]  ;;  %v1489_v39 = vld [vmem:[%s1423_s15 + $0x38] sm:$0xff] }
  0x5e   : > { %v1493_v40 = vld [vmem:[%s1423_s15 + $0x78] sm:$0xff] }
  0x5f   : > { %1010 = vmatpush3.bf16.msra.mxu0 %v1007_v9  ;;  %1041 = vmatpush3.bf16.msra.mxu1 %v1007_v9  ;;  %v1500_v41 = vld [vmem:[%s1746_s2] ss:$0 sm:$0xff] }
  0x60   : > { %1012 = vmatprep.subr.bf16.mxu0 %v1011_v14  ;;  %1034 = vmatprep.subr.bf16.mxu1 %v1011_v14  ;;  %v1508_v49 = vld [vmem:[%s1747_s3] ss:$0 sm:$0xff] }
  0x63   : > { %1014 = vmatpush3.bf16.msra.mxu0 %v1011_v14  ;;  %1042 = vmatpush3.bf16.msra.mxu1 %v1011_v14 }
  0x64   : > { %1016 = vmatprep.subr.bf16.mxu0 %v1015_v17  ;;  %1035 = vmatprep.subr.bf16.mxu1 %v1015_v17 }
  0x67   : > { %1018 = vmatpush3.bf16.msra.mxu0 %v1015_v17  ;;  %1043 = vmatpush3.bf16.msra.mxu1 %v1015_v17 }
  0x68   : > { %1020 = vmatprep.subr.bf16.mxu0 %v1019_v20  ;;  %1036 = vmatprep.subr.bf16.mxu1 %v1019_v20 }
  0x6b   : > { %1022 = vmatpush3.bf16.msra.mxu0 %v1019_v20  ;;  %1044 = vmatpush3.bf16.msra.mxu1 %v1019_v20 }
  0x6c   : > { %1024 = vmatprep.subr.bf16.mxu0 %v1023_v23  ;;  %1037 = vmatprep.subr.bf16.mxu1 %v1023_v23 }
  0x6f   : > { %1026 = vmatpush3.bf16.msra.mxu0 %v1023_v23  ;;  %1045 = vmatpush3.bf16.msra.mxu1 %v1023_v23 }
  0x70   : > { %1028 = vmatprep.subr.bf16.mxu0 %v1027_v26  ;;  %1038 = vmatprep.subr.bf16.mxu1 %v1027_v26 }
  0x73   : > { %1030 = vmatpush3.bf16.msra.mxu0 %v1027_v26  ;;  %1046 = vmatpush3.bf16.msra.mxu1 %v1027_v26 }
  0x76   : > { %976 = vmatmul.mubr.f32.vlgmr.msra.gmra.mrb[0].mxu0 %v1442_v27  ;;  %988 = vmatmul.mubr.f32.vlgmr.msra.gmra.mrb[0].mxu1 %v1445_v28 }
  0x77   : > { %978 = vmatprep.mubr.f32.mxu0 %v1448_v29  ;;  %990 = vmatprep.mubr.f32.mxu1 %v1451_v30 }
  0x7a   : > { %979 = vmatmul.mubr.f32.gmra.mrb[2].mxu0 %v1457_v31  ;;  %991 = vmatmul.mubr.f32.gmra.mrb[2].mxu1 %v1461_v32 }
  0x7b   : > { %981 = vmatprep.mubr.f32.mxu0 %v1464_v33  ;;  %993 = vmatprep.mubr.f32.mxu1 %v1467_v34 }
  0x7e   : > { %982 = vmatmul.mubr.f32.gmra.mrb[4].mxu0 %v1473_v35  ;;  %994 = vmatmul.mubr.f32.gmra.mrb[4].mxu1 %v1477_v36 }
  0x7f   : > { %984 = vmatprep.mubr.f32.mxu0 %v1480_v37  ;;  %996 = vmatprep.mubr.f32.mxu1 %v1483_v38 }
  0x82   : > { %985 = vmatmul.mubr.f32.gmra.mrb[6].mxu0 %v1489_v39  ;;  %997 = vmatmul.mubr.f32.gmra.mrb[6].mxu1 %v1493_v40 }
 0x149   : > { %v977_v42 = vpop.f32.mrb[0].mxu0  ;;  %v989_v43 = vpop.f32.mrb[0].mxu1 }
 0x14a   : > { %v375_v44 = vadd.f32 %v977_v42, %v1500_v41  ;;  %v415_v45 = vadd.f32 %v989_v43, %v1500_v41  ;;  %v369_v46 = vpop.f32.mrb[1].mxu0  ;;  %v409_v47 = vpop.f32.mrb[1].mxu1 }
 0x14b   : > { %v370_v48 = vadd.f32 %v1500_v41, %v369_v46  ;;  %v410_v53 = vadd.f32 %v1500_v41, %v409_v47 }
 0x14c   : > { %v449_v50 = vmax.f32 %v375_v44, 0.0  ;;  %v457_v51 = vmax.f32 %v415_v45, 0.0 }
 0x14d   : > { %v448_v52 = vmax.f32 %v370_v48, 0.0  ;;  %v980_v54 = vpop.f32.mrb[2].mxu0  ;;  %v992_v55 = vpop.f32.mrb[2].mxu1  ;;  %v456_v0 = vmax.f32 %v410_v53, 0.0 }
 0x14e   : > { %v385_v56 = vadd.f32 %v980_v54, %v1500_v41  ;;  %v379_v57 = vpop.f32.mrb[3].mxu0  ;;  %v480_v58 = vmul.f32 %v1508_v49, %v457_v51  ;;  %v425_v59 = vadd.f32 %v992_v55, %v1500_v41  ;;  %v472_v60 = vmul.f32 %v1508_v49, %v449_v50  ;;  %v419_v61 = vpop.f32.mrb[3].mxu1 }
 0x14f   : > { %v380_v3 = vadd.f32 %v1500_v41, %v379_v57  ;;  %v420_v4 = vadd.f32 %v1500_v41, %v419_v61  ;;  %v471_v6 = vmul.f32 %v1508_v49, %v448_v52  ;;  %v479_v18 = vmul.f32 %v1508_v49, %v456_v0 }
 0x150   : > { %v451_v62 = vmax.f32 %v385_v56, 0.0  ;;  %505 = vadd.xlane.f32.xlu1 %v480_v58  ;;  %v459_v63 = vmax.f32 %v425_v59, 0.0  ;;  %489 = vadd.xlane.f32.xlu0 %v472_v60  ;;  %v702_v61 = vmul.f32 %v1434_v10, %v1434_v10  ;;  %v706_v0 = vmul.f32 %v1464_v33, %v1464_v33 }
 0x151   : > { %v983_v1 = vpop.f32.mrb[4].mxu0  ;;  %v995_v2 = vpop.f32.mrb[4].mxu1  ;;  %v450_v16 = vmax.f32 %v380_v3, 0.0  ;;  %v458_v17 = vmax.f32 %v420_v4, 0.0  ;;  %v709_v10 = vmul.f32 %v1489_v39, %v1489_v39  ;;  %v713_v33 = vmul.f32 %v1461_v32, %v1461_v32  ;;  %v1571_v32 = vld [vmem:[#allocation2] ss:$0 sm:$0xff] }
 0x152   : > { %v474_v5 = vmul.f32 %v1508_v49, %v451_v62  ;;  %v389_v7 = vpop.f32.mrb[5].mxu0  ;;  %v429_v8 = vpop.f32.mrb[5].mxu1  ;;  %v395_v9 = vadd.f32 %v983_v1, %v1500_v41  ;;  %v482_v12 = vmul.f32 %v1508_v49, %v459_v63  ;;  %v435_v21 = vadd.f32 %v995_v2, %v1500_v41 }
 0x153   : > { %v390_v13 = vadd.f32 %v1500_v41, %v389_v7  ;;  %v430_v24 = vadd.f32 %v1500_v41, %v429_v8  ;;  %v473_v25 = vmul.f32 %v1508_v49, %v450_v16  ;;  %v481_v26 = vmul.f32 %v1508_v49, %v458_v17 }
 0x154   : > { %493 = vadd.xlane.f32.xlu1 %v474_v5  ;;  %487 = vadd.xlane.f32.xlu0 %v471_v6  ;;  %v453_v22 = vmax.f32 %v395_v9, 0.0  ;;  %v461_v42 = vmax.f32 %v435_v21, 0.0  ;;  %v705_v62 = vmul.f32 %v1457_v31, %v1457_v31  ;;  %v704_v63 = vmul.f32 %v1448_v29, %v1448_v29 }
 0x155   : > { %v986_v14 = vpop.f32.mrb[6].mxu0  ;;  %v998_v15 = vpop.f32.mrb[6].mxu1  ;;  %v452_v23 = vmax.f32 %v390_v13, 0.0  ;;  %v460_v44 = vmax.f32 %v430_v24, 0.0  ;;  %v711_v29 = vmul.f32 %v1445_v28, %v1445_v28  ;;  %v710_v31 = vmul.f32 %v1437_v11, %v1437_v11 }
 0x156   : > { %v399_v19 = vpop.f32.mrb[7].mxu0  ;;  %v439_v20 = vpop.f32.mrb[7].mxu1  ;;  %v405_v43 = vadd.f32 %v986_v14, %v1500_v41  ;;  %v476_v46 = vmul.f32 %v1508_v49, %v453_v22  ;;  %v445_v48 = vadd.f32 %v998_v15, %v1500_v41  ;;  %v484_v50 = vmul.f32 %v1508_v49, %v461_v42 }
 0x157   : > { %v400_v45 = vadd.f32 %v1500_v41, %v399_v19  ;;  %v475_v47 = vmul.f32 %v1508_v49, %v452_v23  ;;  %v440_v53 = vadd.f32 %v1500_v41, %v439_v20  ;;  %v483_v54 = vmul.f32 %v1508_v49, %v460_v44 }
 0x158   : > { %509 = vadd.xlane.f32.xlu1 %v482_v12  ;;  %503 = vadd.xlane.f32.xlu0 %v479_v18  ;;  %v455_v51 = vmax.f32 %v405_v43, 0.0  ;;  %v463_v55 = vmax.f32 %v445_v48, 0.0  ;;  %v703_v41 = vmul.f32 %v1442_v27, %v1442_v27  ;;  %v708_v27 = vmul.f32 %v1480_v37, %v1480_v37 }
 0x159   : > { %v454_v52 = vmax.f32 %v400_v45, 0.0  ;;  %v462_v56 = vmax.f32 %v440_v53, 0.0  ;;  %v715_v37 = vmul.f32 %v1477_v36, %v1477_v36  ;;  %v714_v39 = vmul.f32 %v1467_v34, %v1467_v34 }
 0x15a   : > { %v478_v57 = vmul.f32 %v1508_v49, %v455_v51  ;;  %v486_v59 = vmul.f32 %v1508_v49, %v463_v55  ;;  %v717_v11 = vmul.f32 %v1493_v40, %v1493_v40  ;;  %v716_v28 = vmul.f32 %v1483_v38, %v1483_v38 }
 0x15b   : > { %v477_v58 = vmul.f32 %v1508_v49, %v454_v52  ;;  %v485_v60 = vmul.f32 %v1508_v49, %v462_v56  ;;  %v707_v49 = vmul.f32 %v1473_v35, %v1473_v35  ;;  %v712_v35 = vmul.f32 %v1451_v30, %v1451_v30 }
 0x15c   : > { %491 = vadd.xlane.f32.xlu1 %v473_v25  ;;  %507 = vadd.xlane.f32.xlu0 %v481_v26 }
 0x160   : > { %497 = vadd.xlane.f32.xlu1 %v476_v46  ;;  %495 = vadd.xlane.f32.xlu0 %v475_v47 }
 0x164   : > { %513 = vadd.xlane.f32.xlu1 %v484_v50  ;;  %511 = vadd.xlane.f32.xlu0 %v483_v54 }
 0x168   : > { %501 = vadd.xlane.f32.xlu1 %v478_v57  ;;  %499 = vadd.xlane.f32.xlu0 %v477_v58 }
 0x16c   : > { %517 = vadd.xlane.f32.xlu1 %v486_v59  ;;  %515 = vadd.xlane.f32.xlu0 %v485_v60 }
 0x170   : > { %720 = vadd.xlane.f32.xlu1 %v703_v41  ;;  %718 = vadd.xlane.f32.xlu0 %v702_v61 }
 0x174   : > { %724 = vadd.xlane.f32.xlu1 %v705_v62  ;;  %722 = vadd.xlane.f32.xlu0 %v704_v63 }
 0x178   : > { %728 = vadd.xlane.f32.xlu1 %v707_v49  ;;  %726 = vadd.xlane.f32.xlu0 %v706_v0 }
 0x17c   : > { %732 = vadd.xlane.f32.xlu1 %v709_v10  ;;  %730 = vadd.xlane.f32.xlu0 %v708_v27 }
 0x180   : > { %736 = vadd.xlane.f32.xlu1 %v711_v29  ;;  %734 = vadd.xlane.f32.xlu0 %v710_v31 }
 0x184   : > { %740 = vadd.xlane.f32.xlu1 %v713_v33  ;;  %738 = vadd.xlane.f32.xlu0 %v712_v35 }
 0x188   : > { %744 = vadd.xlane.f32.xlu1 %v715_v37  ;;  %742 = vadd.xlane.f32.xlu0 %v714_v39 }
 0x18c   : > { %748 = vadd.xlane.f32.xlu1 %v717_v11  ;;  %746 = vadd.xlane.f32.xlu0 %v716_v28 }
 0x1dd   : > { %v506_v30 = vpop.xlane.xlu1 %505  ;;  %v490_v1 = vpop.xlane.xlu0 %489 }
 0x1de   : > { %v1574_v2 = vadd.f32 %v1571_v32, %v506_v30  ;;  %v1577_v36 = vadd.f32 %v1571_v32, %v490_v1 }
 0x1e0   : > { %v567_v34 = vand.u32 2147483647, %v1574_v2  ;;  %v559_v3 = vand.u32 2147483647, %v1577_v36 }
 0x1e1   : > { %v494_v40 = vpop.xlane.xlu1 %493  ;;  %v488_v4 = vpop.xlane.xlu0 %487 }
 0x1e2   : > { %v583_v5 = vsub.f32 0.0, %v567_v34  ;;  %v575_v38 = vsub.f32 0.0, %v559_v3  ;;  %v1582_v6 = vadd.f32 %v1571_v32, %v494_v40  ;;  %v1585_v7 = vadd.f32 %v1571_v32, %v488_v4 }
 0x1e4   : > { %v608_v8 = vmul.f32 1.442695, %v583_v5  ;;  %v592_v9 = vmul.f32 1.442695, %v575_v38  ;;  %v561_v12 = vand.u32 2147483647, %v1582_v6 }
 0x1e5   : > { %v558_v13 = vand.u32 2147483647, %v1585_v7  ;;  %v510_v14 = vpop.xlane.xlu1 %509  ;;  %v504_v15 = vpop.xlane.xlu0 %503 }
 0x1e6   : > { %1099 = vpow2.f32 %v608_v8  ;;  %v1590_v16 = vadd.f32 %v1571_v32, %v510_v14  ;;  %v1593_v17 = vadd.f32 %v1571_v32, %v504_v15  ;;  %v577_v18 = vsub.f32 0.0, %v561_v12 }
 0x1e7   : > { %1101 = vpow2.f32 %v592_v9  ;;  %v574_v19 = vsub.f32 0.0, %v558_v13 }
 0x1e8   : > { %v569_v20 = vand.u32 2147483647, %v1590_v16  ;;  %v566_v21 = vand.u32 2147483647, %v1593_v17  ;;  %v596_v22 = vmul.f32 1.442695, %v577_v18 }
 0x1e9   : > { %v590_v23 = vmul.f32 1.442695, %v574_v19  ;;  %v492_v24 = vpop.xlane.xlu1 %491  ;;  %v508_v25 = vpop.xlane.xlu0 %507 }
 0x1ea   : > { %v585_v26 = vsub.f32 0.0, %v569_v20  ;;  %v582_v42 = vsub.f32 0.0, %v566_v21  ;;  %v1598_v43 = vadd.f32 %v1571_v32, %v492_v24  ;;  %v1601_v44 = vadd.f32 %v1571_v32, %v508_v25 }
 0x1eb   : > { %1103 = vpow2.f32 %v596_v22  ;;  %v551_v24 = vmax.f32 %v1574_v2, 0.0 }
 0x1ec   : > { %1105 = vpow2.f32 %v590_v23  ;;  %v612_v45 = vmul.f32 1.442695, %v585_v26  ;;  %v606_v46 = vmul.f32 1.442695, %v582_v42  ;;  %v560_v47 = vand.u32 2147483647, %v1598_v43 }
 0x1ed   : > { %v568_v48 = vand.u32 2147483647, %v1601_v44  ;;  %v498_v50 = vpop.xlane.xlu1 %497  ;;  %v496_v51 = vpop.xlane.xlu0 %495 }
 0x1ee   : > { %1107 = vpow2.f32 %v612_v45  ;;  %v1606_v52 = vadd.f32 %v1571_v32, %v498_v50  ;;  %v1609_v53 = vadd.f32 %v1571_v32, %v496_v51  ;;  %v576_v54 = vsub.f32 0.0, %v560_v47 }
 0x1ef   : > { %1109 = vpow2.f32 %v606_v46  ;;  %v584_v55 = vsub.f32 0.0, %v568_v48  ;;  %v543_v45 = vmax.f32 %v1577_v36, 0.0  ;;  %v545_v46 = vmax.f32 %v1582_v6, 0.0 }
 0x1f0   : > { %v1100_v56 = vpop.eup %1099  ;;  %v563_v57 = vand.u32 2147483647, %v1606_v52  ;;  %v562_v58 = vand.u32 2147483647, %v1609_v53  ;;  %v594_v41 = vmul.f32 1.442695, %v576_v54 }
 0x1f1   : > { %v1102_v59 = vpop.eup %1101  ;;  %v631_v60 = vadd.f32 1.0, %v1100_v56  ;;  %v610_v61 = vmul.f32 1.442695, %v584_v55  ;;  %v514_v62 = vpop.xlane.xlu1 %513  ;;  %v542_v51 = vmax.f32 %v1585_v7, 0.0  ;;  %v553_v36 = vmax.f32 %v1590_v16, 0.0 }
 0x1f2   : > { %v512_v63 = vpop.xlane.xlu0 %511  ;;  %v623_v49 = vadd.f32 1.0, %v1102_v59  ;;  %v579_v0 = vsub.f32 0.0, %v563_v57  ;;  %v578_v10 = vsub.f32 0.0, %v562_v58  ;;  %v1614_v27 = vadd.f32 %v1571_v32, %v514_v62 }
 0x1f3   : > { %1111 = vlog2.f32 %v631_v60  ;;  %v1617_v29 = vadd.f32 %v1571_v32, %v512_v63  ;;  %v550_v59 = vmax.f32 %v1593_v17, 0.0 }
 0x1f4   : > { %1113 = vlog2.f32 %v623_v49  ;;  %v600_v31 = vmul.f32 1.442695, %v579_v0  ;;  %v598_v35 = vmul.f32 1.442695, %v578_v10  ;;  %v571_v37 = vand.u32 2147483647, %v1614_v27 }
 0x1f5   : > { %v1104_v33 = vpop.eup %1103  ;;  %1115 = vpow2.f32 %v594_v41  ;;  %v570_v39 = vand.u32 2147483647, %v1617_v29  ;;  %v502_v11 = vpop.xlane.xlu1 %501 }
 0x1f6   : > { %v500_v28 = vpop.xlane.xlu0 %499  ;;  %v1106_v30 = vpop.eup %1105  ;;  %v625_v1 = vadd.f32 1.0, %v1104_v33  ;;  %1117 = vpow2.f32 %v610_v61  ;;  %v1622_v34 = vadd.f32 %v1571_v32, %v502_v11  ;;  %v587_v4 = vsub.f32 0.0, %v571_v37 }
 0x1f7   : > { %v1625_v3 = vadd.f32 %v1571_v32, %v500_v28  ;;  %v622_v40 = vadd.f32 1.0, %v1106_v30  ;;  %1119 = vpow2.f32 %v600_v31  ;;  %v586_v5 = vsub.f32 0.0, %v570_v39 }
 0x1f8   : > { %v1108_v38 = vpop.eup %1107  ;;  %1121 = vlog2.f32 %v625_v1  ;;  %v565_v8 = vand.u32 2147483647, %v1622_v34  ;;  %v616_v13 = vmul.f32 1.442695, %v587_v4  ;;  %v544_v33 = vmax.f32 %v1598_v43, 0.0 }
 0x1f9   : > { %v1110_v9 = vpop.eup %1109  ;;  %1123 = vlog2.f32 %v622_v40  ;;  %v633_v12 = vadd.f32 1.0, %v1108_v38  ;;  %v614_v14 = vmul.f32 1.442695, %v586_v5  ;;  %v518_v15 = vpop.xlane.xlu1 %517  ;;  %v564_v21 = vand.u32 2147483647, %v1625_v3 }
 0x1fa   : > { %v516_v18 = vpop.xlane.xlu0 %515  ;;  %v630_v19 = vadd.f32 1.0, %v1110_v9  ;;  %1125 = vpow2.f32 %v598_v35  ;;  %v581_v20 = vsub.f32 0.0, %v565_v8  ;;  %v1634_v22 = vadd.f32 %v1571_v32, %v518_v15 }
 0x1fb   : > { %1127 = vlog2.f32 %v633_v12  ;;  %v1637_v23 = vadd.f32 %v1571_v32, %v516_v18  ;;  %v580_v26 = vsub.f32 0.0, %v564_v21  ;;  %v552_v11 = vmax.f32 %v1601_v44, 0.0 }
 0x1fc   : > { %1129 = vlog2.f32 %v630_v19  ;;  %v604_v25 = vmul.f32 1.442695, %v581_v20  ;;  %v573_v47 = vand.u32 2147483647, %v1634_v22  ;;  %v547_v18 = vmax.f32 %v1606_v52, 0.0 }
 0x1fd   : > { %v1112_v42 = vpop.eup %1111  ;;  %1131 = vpow2.f32 %v616_v13  ;;  %v721_v48 = vpop.xlane.xlu1 %720  ;;  %v602_v54 = vmul.f32 1.442695, %v580_v26  ;;  %v572_v55 = vand.u32 2147483647, %v1637_v23  ;;  %v546_v19 = vmax.f32 %v1609_v53, 0.0 }
 0x1fe   : > { %v719_v50 = vpop.xlane.xlu0 %718  ;;  %v1114_v32 = vpop.eup %1113  ;;  %1133 = vpow2.f32 %v614_v14  ;;  %v589_v6 = vsub.f32 0.0, %v573_v47  ;;  %v751_v49 = vmul.f32 1.5, %v721_v48  ;;  %v657_v1 = vmul.f32 0.6931472, %v1112_v42 }
 0x1ff   : > { %v1116_v56 = vpop.eup %1115  ;;  %v641_v57 = vmul.f32 0.6931472, %v1114_v32  ;;  %1135 = vpow2.f32 %v604_v25  ;;  %v588_v7 = vsub.f32 0.0, %v572_v55  ;;  %v750_v52 = vmul.f32 1.5, %v719_v50 }
 0x200   : > { %v1118_v58 = vpop.eup %1117  ;;  %v624_v60 = vadd.f32 1.0, %v1116_v56  ;;  %1137 = vpow2.f32 %v602_v54  ;;  %v620_v63 = vmul.f32 1.442695, %v589_v6  ;;  %v679_v32 = vadd.f32 %v657_v1, %v551_v24 }
 0x201   : > { %v1120_v41 = vpop.eup %1119  ;;  %v671_v61 = vadd.f32 %v641_v57, %v543_v45  ;;  %v632_v62 = vadd.f32 1.0, %v1118_v58  ;;  %v725_v0 = vpop.xlane.xlu1 %724  ;;  %v618_v37 = vmul.f32 1.442695, %v588_v7  ;;  %v555_v45 = vmax.f32 %v1614_v27, 0.0 }
 0x202   : > { %v1653_v10 = vpop.xlane.xlu0 %722  ;;  %v1122_v31 = vpop.eup %1121  ;;  %1139 = vlog2.f32 %v624_v60  ;;  %v627_v35 = vadd.f32 1.0, %v1120_v41  ;;  %v753_v4 = vmul.f32 1.5, %v725_v0  ;;  %v554_v50 = vmax.f32 %v1617_v29, 0.0 }
 0x203   : > { %v1124_v39 = vpop.eup %1123  ;;  %v645_v17 = vmul.f32 0.6931472, %v1122_v31  ;;  %1141 = vlog2.f32 %v632_v62  ;;  %v687_v28 = vmul.f32 0.5, %v671_v61  ;;  %v549_v61 = vmax.f32 %v1622_v34, 0.0 }
 0x204   : > { %v1126_v30 = vpop.eup %1125  ;;  %v639_v40 = vmul.f32 0.6931472, %v1124_v39  ;;  %1143 = vlog2.f32 %v627_v35  ;;  %v548_v62 = vmax.f32 %v1625_v3, 0.0  ;;  %v695_v31 = vmul.f32 0.5, %v679_v32 }
 0x205   : > { %v1128_v5 = vpop.eup %1127  ;;  %v673_v38 = vadd.f32 %v645_v17, %v545_v46  ;;  %v626_v8 = vadd.f32 1.0, %v1126_v30  ;;  %1145 = vpow2.f32 %v620_v63  ;;  %v767_v9 = vsub.f32 %v687_v28, %v751_v49  ;;  %v729_v12 = vpop.xlane.xlu1 %728 }
 0x206   : > { %v1658_v13 = vpop.xlane.xlu0 %726  ;;  %v1130_v14 = vpop.eup %1129  ;;  %v670_v15 = vadd.f32 %v639_v40, %v542_v51  ;;  %1147 = vpow2.f32 %v618_v37  ;;  %v661_v51 = vmul.f32 0.6931472, %v1128_v5  ;;  %v755_v5 = vmul.f32 1.5, %v729_v12 }
 0x207   : > { %v1132_v20 = vpop.eup %1131  ;;  %v655_v21 = vmul.f32 0.6931472, %v1130_v14  ;;  %1149 = vlog2.f32 %v626_v8  ;;  %v783_v25 = vadd.f32 5.0, %v767_v9  ;;  %v689_v26 = vmul.f32 0.5, %v673_v38 }
 0x208   : > { %v1134_v42 = vpop.eup %1133  ;;  %v635_v46 = vadd.f32 1.0, %v1132_v20  ;;  %v686_v47 = vmul.f32 0.5, %v670_v15 }
 0x209   : > { %v1136_v48 = vpop.eup %1135  ;;  %v634_v54 = vadd.f32 1.0, %v1134_v42  ;;  %800 = vst.msk [vmem:[%s1665_s7 + $0x8] sm:$0xff] %vm798_vm0, %v783_v25  ;;  %v769_v55 = vsub.f32 %v689_v26, %v753_v4  ;;  %v1672_v56 = vpop.xlane.xlu1 %732  ;;  %v678_v58 = vadd.f32 %v655_v21, %v550_v59  ;;  %v681_v59 = vadd.f32 %v661_v51, %v553_v36 }
 0x20a   : > { %v1674_v57 = vpop.xlane.xlu0 %730  ;;  %v1138_v6 = vpop.eup %1137  ;;  %1151 = vlog2.f32 %v635_v46  ;;  %v629_v60 = vadd.f32 1.0, %v1136_v48  ;;  %v766_v7 = vsub.f32 %v686_v47, %v750_v52  ;;  %v752_v36 = vmul.f32 1.5, %v1653_v10 }
 0x20b   : > { %1153 = vlog2.f32 %v634_v54  ;;  %v628_v2 = vadd.f32 1.0, %v1138_v6  ;;  %v785_v24 = vadd.f32 5.0, %v769_v55  ;;  %v694_v30 = vmul.f32 0.5, %v678_v58 }
 0x20c   : > { %v1140_v41 = vpop.eup %1139  ;;  %1155 = vlog2.f32 %v629_v60  ;;  %v782_v63 = vadd.f32 5.0, %v766_v7  ;;  %v697_v42 = vmul.f32 0.5, %v681_v59 }
 0x20d   : > { %v1142_v49 = vpop.eup %1141  ;;  %v643_v0 = vmul.f32 0.6931472, %v1140_v41  ;;  %1157 = vlog2.f32 %v628_v2  ;;  %802 = vst.msk [vmem:[%s1665_s7 + $0x18] sm:$0xff] %vm798_vm0, %v785_v24  ;;  %v737_v35 = vpop.xlane.xlu1 %736 }
 0x20e   : > { %v735_v37 = vpop.xlane.xlu0 %734  ;;  %v1144_v39 = vpop.eup %1143  ;;  %v659_v17 = vmul.f32 0.6931472, %v1142_v49  ;;  %799 = vst.msk [vmem:[%s1665_s7] sm:$0xff] %vm798_vm0, %v782_v63  ;;  %v759_v28 = vmul.f32 1.5, %v737_v35 }
 0x20f   : > { %v758_v1 = vmul.f32 1.5, %v735_v37  ;;  %v1146_v40 = vpop.eup %1145  ;;  %v672_v4 = vadd.f32 %v643_v0, %v544_v33  ;;  %v649_v16 = vmul.f32 0.6931472, %v1144_v39 }
 0x210   : > { %v1148_v38 = vpop.eup %1147  ;;  %v680_v8 = vadd.f32 %v659_v17, %v552_v11  ;;  %v637_v9 = vadd.f32 1.0, %v1146_v40  ;;  %v775_v14 = vsub.f32 %v695_v31, %v759_v28  ;;  %v757_v40 = vmul.f32 1.5, %v1672_v56 }
 0x211   : > { %v774_v15 = vsub.f32 %v694_v30, %v758_v1  ;;  %v1150_v20 = vpop.eup %1149  ;;  %v675_v21 = vadd.f32 %v649_v16, %v547_v18  ;;  %v636_v25 = vadd.f32 1.0, %v1148_v38  ;;  %v688_v26 = vmul.f32 0.5, %v672_v4  ;;  %v741_v43 = vpop.xlane.xlu1 %740 }
 0x212   : > { %v739_v33 = vpop.xlane.xlu0 %738  ;;  %v647_v46 = vmul.f32 0.6931472, %v1150_v20  ;;  %1159 = vlog2.f32 %v637_v9  ;;  %v791_v10 = vadd.f32 5.0, %v775_v14  ;;  %v761_v11 = vmul.f32 1.5, %v741_v43 }
 0x213   : > { %v790_v12 = vadd.f32 5.0, %v774_v15  ;;  %1161 = vlog2.f32 %v636_v25  ;;  %v768_v47 = vsub.f32 %v688_v26, %v752_v36  ;;  %v691_v44 = vmul.f32 0.5, %v675_v21 }
 0x214   : > { %v1152_v52 = vpop.eup %1151  ;;  %v674_v48 = vadd.f32 %v647_v46, %v546_v19  ;;  %v754_v18 = vmul.f32 1.5, %v1658_v13  ;;  %808 = vst.msk [vmem:[%s1665_s7 + $0x48] sm:$0xff] %vm798_vm0, %v791_v10  ;;  %v696_v32 = vmul.f32 0.5, %v680_v8  ;;  %v760_v51 = vmul.f32 1.5, %v739_v33 }
 0x215   : > { %807 = vst.msk [vmem:[%s1665_s7 + $0x40] sm:$0xff] %vm798_vm0, %v790_v12  ;;  %v1154_v54 = vpop.eup %1153  ;;  %v665_v55 = vmul.f32 0.6931472, %v1152_v52  ;;  %v784_v6 = vadd.f32 5.0, %v768_v47  ;;  %v771_v58 = vsub.f32 %v691_v44, %v755_v5  ;;  %v777_v60 = vsub.f32 %v697_v42, %v761_v11  ;;  %v745_v7 = vpop.xlane.xlu1 %744 }
 0x216   : > { %v1156_v2 = vpop.eup %1155  ;;  %v663_v24 = vmul.f32 0.6931472, %v1154_v54  ;;  %v690_v53 = vmul.f32 0.5, %v674_v48  ;;  %v776_v19 = vsub.f32 %v696_v32, %v760_v51  ;;  %v763_v13 = vmul.f32 1.5, %v745_v7  ;;  %v743_v41 = vpop.xlane.xlu0 %742 }
 0x217   : > { %v1158_v63 = vpop.eup %1157  ;;  %v683_v49 = vadd.f32 %v665_v55, %v555_v45  ;;  %v653_v59 = vmul.f32 0.6931472, %v1156_v2  ;;  %801 = vst.msk [vmem:[%s1665_s7 + $0x10] sm:$0xff] %vm798_vm0, %v784_v6  ;;  %v787_v0 = vadd.f32 5.0, %v771_v58  ;;  %v793_v31 = vadd.f32 5.0, %v777_v60 }
 0x218   : > { %v682_v35 = vadd.f32 %v663_v24, %v554_v50  ;;  %v651_v37 = vmul.f32 0.6931472, %v1158_v63  ;;  %v770_v39 = vsub.f32 %v690_v53, %v754_v18  ;;  %v792_v17 = vadd.f32 5.0, %v776_v19 }
 0x219   : > { %v677_v28 = vadd.f32 %v653_v59, %v549_v61  ;;  %804 = vst.msk [vmem:[%s1665_s7 + $0x28] sm:$0xff] %vm798_vm0, %v787_v0  ;;  %810 = vst.msk [vmem:[%s1665_s7 + $0x58] sm:$0xff] %vm798_vm0, %v793_v31  ;;  %v699_v27 = vmul.f32 0.5, %v683_v49  ;;  %v762_v45 = vmul.f32 1.5, %v743_v41  ;;  %v756_v61 = vmul.f32 1.5, %v1674_v57  ;;  %v749_v5 = vpop.xlane.xlu1 %748 }
 0x21a   : > { %v676_v30 = vadd.f32 %v651_v37, %v548_v62  ;;  %v786_v1 = vadd.f32 5.0, %v770_v39  ;;  %809 = vst.msk [vmem:[%s1665_s7 + $0x50] sm:$0xff] %vm798_vm0, %v792_v17  ;;  %v698_v29 = vmul.f32 0.5, %v682_v35  ;;  %v557_v62 = vmax.f32 %v1634_v22, 0.0  ;;  %v747_v56 = vpop.xlane.xlu0 %746 }
 0x21b   : > { %v693_v50 = vmul.f32 0.5, %v677_v28  ;;  %v779_v4 = vsub.f32 %v699_v27, %v763_v13  ;;  %v556_v14 = vmax.f32 %v1637_v23, 0.0  ;;  %v765_v26 = vmul.f32 1.5, %v749_v5 }
 0x21c   : > { %v1160_v16 = vpop.eup %1159  ;;  %803 = vst.msk [vmem:[%s1665_s7 + $0x20] sm:$0xff] %vm798_vm0, %v786_v1  ;;  %v692_v34 = vmul.f32 0.5, %v676_v30  ;;  %v778_v36 = vsub.f32 %v698_v29, %v762_v45  ;;  %v764_v43 = vmul.f32 1.5, %v747_v56 }
 0x21d   : > { %v1162_v3 = vpop.eup %1161  ;;  %v773_v38 = vsub.f32 %v693_v50, %v757_v40  ;;  %v795_v8 = vadd.f32 5.0, %v779_v4  ;;  %v669_v9 = vmul.f32 0.6931472, %v1160_v16 }
 0x21e   : > { %v772_v15 = vsub.f32 %v692_v34, %v756_v61  ;;  %v794_v20 = vadd.f32 5.0, %v778_v36  ;;  %v667_v21 = vmul.f32 0.6931472, %v1162_v3 }
 0x21f   : > { %v789_v25 = vadd.f32 5.0, %v773_v38  ;;  %812 = vst.msk [vmem:[%s1665_s7 + $0x68] sm:$0xff] %vm798_vm0, %v795_v8  ;;  %v685_v57 = vadd.f32 %v669_v9, %v557_v62 }
 0x220   : > { %v788_v42 = vadd.f32 5.0, %v772_v15  ;;  %811 = vst.msk [vmem:[%s1665_s7 + $0x60] sm:$0xff] %vm798_vm0, %v794_v20  ;;  %v684_v22 = vadd.f32 %v667_v21, %v556_v14 }
 0x221   : > { %806 = vst.msk [vmem:[%s1665_s7 + $0x38] sm:$0xff] %vm798_vm0, %v789_v25  ;;  %v701_v33 = vmul.f32 0.5, %v685_v57 }
 0x222   : > { %805 = vst.msk [vmem:[%s1665_s7 + $0x30] sm:$0xff] %vm798_vm0, %v788_v42  ;;  %v700_v23 = vmul.f32 0.5, %v684_v22 }
 0x223   : > { %v781_v46 = vsub.f32 %v701_v33, %v765_v26 }
 0x224   : > { %v780_v10 = vsub.f32 %v700_v23, %v764_v43 }
 0x225   : > { %v797_v12 = vadd.f32 5.0, %v781_v46 }
 0x226   : > { %v796_v47 = vadd.f32 5.0, %v780_v10 }
 0x227   : > { %814 = vst.msk [vmem:[%s1665_s7 + $0x78] sm:$0xff] %vm798_vm0, %v797_v12 }
 0x228   : > { %813 = vst.msk [vmem:[%s1665_s7 + $0x70] sm:$0xff] %vm798_vm0, %v796_v47 }
 0x229 PF: > { %s1762_s6 = smov %s1374_s20  ;;  %p18_p6 = scmp.ge.s32.totalorder %s1345_s30, 4  }
 0x22a   : > { %s1763_s20 = smov %s1251_s21  ;;  %s1764_s21 = smov %s1255_s22 }
 0x22b   : > { %s1765_s22 = smov %s1762_s6  ;;  %s1766_s23 = smov %s1345_s30 }
 0x22c   :  { %20 = sbr.rel (!%p18_p6) target bundleno = 7 (0x7), region = 84 }
 0x233   :  { %837 = vsyncpa [#allocation4], 1 }
 0x234   :  { %839 = vsyncpa [#allocation4 + $0x1], 1 }
 0x235   :  { %840 = vsyncpa [#allocation6], 1 }

</bundles_post_ra>
